<compile_context>
chip_gen: v6e
topology: v6e:2x2x1
jax: 0.10.0
libtpu: 0.0.40
codegen_flags: <defaults>
</compile_context>

<pallas_src>
import functools

import jax
import jax.numpy as jnp
from jax import lax
from jax.experimental import pallas as pl
from jax.experimental.pallas import tpu as pltpu


def _round_up(v, m):
    return (v + m - 1) // m * m


def _lstm_recurrence_kernel(xw_ref, wh_ref, out_ref, hn_ref, cn_ref,
                            h_scr, c_scr, *, hidden, t_chunk):
    """One grid step == T_CHUNK LSTM time steps over a (tile_bn) batch tile.

    xw_ref : (tile_bn, t_chunk*4H) f32   pre-projected x@W_ih^T + b
    wh_ref : (H, 4H)               bf16  recurrent weight (constant block)
    out_ref: (tile_bn, t_chunk*H)  f32   per-step hidden states (lane-dense)
    hn_ref : (tile_bn, H)          f32   final hidden state
    cn_ref : (tile_bn, H)          f32   final cell state
    """
    tc = pl.program_id(1)
    H = hidden
    G = 4 * H

    @pl.when(tc == 0)
    def _():
        h_scr[...] = jnp.zeros_like(h_scr)
        c_scr[...] = jnp.zeros_like(c_scr)

    h = h_scr[...]                       # (tile_bn, H) f32
    c = c_scr[...]                       # (tile_bn, H) f32
    wh = wh_ref[...]                     # (H, 4H) bf16 (constant across grid)

    # Static unroll over the chunk: all slices below have static offsets,
    # and for H % 32 == 0 the gate slab offsets are 128-lane aligned.
    for t in range(t_chunk):
        gates = xw_ref[:, t * G:(t + 1) * G] + jnp.dot(
            h.astype(wh.dtype), wh, preferred_element_type=jnp.float32)

        i_g = jax.nn.sigmoid(gates[:, 0 * H:1 * H])
        f_g = jax.nn.sigmoid(gates[:, 1 * H:2 * H])
        g_g = jnp.tanh(gates[:, 2 * H:3 * H])
        o_g = jax.nn.sigmoid(gates[:, 3 * H:4 * H])

        c = f_g * c + i_g * g_g
        h = o_g * jnp.tanh(c)
        out_ref[:, t * H:(t + 1) * H] = h.astype(out_ref.dtype)

    h_scr[...] = h
    c_scr[...] = c
    # Written every time chunk (cheap) so these blocks never flush
    # uninitialized data; the values surviving the last chunk are final.
    hn_ref[...] = h.astype(hn_ref.dtype)
    cn_ref[...] = c.astype(cn_ref.dtype)


def _lstm_recurrence(xw2d, wh_bf16, *, hidden, seq, tile_bn, t_chunk):
    """xw2d: (BN_pad, S*4H) f32.

    Returns (out (BN_pad, S*H), h_n (BN_pad, H), c_n (BN_pad, H)).
    """
    BN_pad = xw2d.shape[0]
    H = hidden
    G = 4 * H
    n_bn = BN_pad // tile_bn
    n_tc = seq // t_chunk

    kernel = functools.partial(_lstm_recurrence_kernel,
                               hidden=H, t_chunk=t_chunk)

    grid_spec = pltpu.PrefetchScalarGridSpec(
        num_scalar_prefetch=0,
        grid=(n_bn, n_tc),
        in_specs=[
            # pre-projected gates for this (bn tile, time chunk)
            pl.BlockSpec((tile_bn, t_chunk * G), lambda b, t: (b, t)),
            # recurrent weight: constant block index -> fetched once, reused
            pl.BlockSpec((H, G), lambda b, t: (0, 0)),
        ],
        out_specs=[
            pl.BlockSpec((tile_bn, t_chunk * H), lambda b, t: (b, t)),
            pl.BlockSpec((tile_bn, H), lambda b, t: (b, 0)),
            pl.BlockSpec((tile_bn, H), lambda b, t: (b, 0)),
        ],
        scratch_shapes=[
            pltpu.VMEM((tile_bn, H), jnp.float32),   # h state
            pltpu.VMEM((tile_bn, H), jnp.float32),   # c state
        ],
    )

    return pl.pallas_call(
        kernel,
        out_shape=(
            jax.ShapeDtypeStruct((BN_pad, seq * H), jnp.float32),
            jax.ShapeDtypeStruct((BN_pad, H), jnp.float32),
            jax.ShapeDtypeStruct((BN_pad, H), jnp.float32),
        ),
        grid_spec=grid_spec,
        compiler_params=pltpu.CompilerParams(
            # bn-tile axis is embarrassingly parallel (uses both TCs on v7x);
            # time axis carries the recurrence -> "arbitrary" (sequential).
            dimension_semantics=("parallel", "arbitrary")),
    )(xw2d, wh_bf16)


@functools.partial(jax.jit, static_argnames=("t_chunk", "tile_bn"))
def homo_encoder_forward(x, wx, wh, b, t_chunk=None, tile_bn=None):
    """HomoEncoder forward with shared params.

    x : (batch, node, seq, input)
    wx: (I, 4H) = W_ih^T     wh: (H, 4H) = W_hh^T     b: (1, 4H) = b_ih + b_hh

    Returns (output (B,N,S,H), (h_n (B,N,H), c_n (B,N,H))) -- PyTorch semantics.
    """
    B, N, S, I = x.shape
    H = wh.shape[0]
    BN = B * N
    assert H % 8 == 0

    if t_chunk is None:
        t_chunk = S                       # demo shapes: whole sequence per step
    assert S % t_chunk == 0
    if t_chunk != S:
        # lane-dense block constraints when chunking the time axis
        assert (t_chunk * H) % 128 == 0
        assert (t_chunk * 4 * H) % 128 == 0
    if tile_bn is None:
        tile_bn = min(_round_up(BN, 8), 256)
    BN_pad = _round_up(BN, tile_bn)

    # ---- Hoisted input projection: one big bf16 MXU matmul, no serial path.
    # (B,N,S,I) -> (BN*S, I) is a free reshape (no HBM transpose).
    x_flat = x.reshape(BN * S, I)
    xw = jnp.dot(x_flat.astype(jnp.bfloat16), wx.astype(jnp.bfloat16),
                 preferred_element_type=jnp.float32) + b.astype(jnp.float32)
    xw2d = xw.reshape(BN, S * 4 * H)      # lane-dense kernel input (free reshape)
    if BN_pad != BN:
        xw2d = jnp.pad(xw2d, ((0, BN_pad - BN), (0, 0)))

    # ---- Serial recurrence in Pallas.
    out2d, h_n, c_n = _lstm_recurrence(xw2d, wh.astype(jnp.bfloat16),
                                       hidden=H, seq=S,
                                       tile_bn=tile_bn, t_chunk=t_chunk)

    # (BN, S*H) -> (B, N, S, H) is a free reshape.
    output = out2d[:BN].reshape(B, N, S, H)
    h_n = h_n[:BN].reshape(B, N, H)
    c_n = c_n[:BN].reshape(B, N, H)
    return output, (h_n, c_n)


def _lstm_reference(x_tm, wx, wh, b):
    """Pure-JAX reference (lax.scan) with matched bf16 MXU inputs / f32 accum."""
    H = wh.shape[0]
    wx_bf = wx.astype(jnp.bfloat16)
    wh_bf = wh.astype(jnp.bfloat16)

    def step(carry, x_t):
        h, c = carry
        gates = (jnp.dot(x_t.astype(jnp.bfloat16), wx_bf,
                         preferred_element_type=jnp.float32)
                 + jnp.dot(h.astype(jnp.bfloat16), wh_bf,
                           preferred_element_type=jnp.float32)
                 + b)
        i = jax.nn.sigmoid(gates[:, 0 * H:1 * H])
        f = jax.nn.sigmoid(gates[:, 1 * H:2 * H])
        g = jnp.tanh(gates[:, 2 * H:3 * H])
        o = jax.nn.sigmoid(gates[:, 3 * H:4 * H])
        c = f * c + i * g
        h = o * jnp.tanh(c)
        return (h, c), h

    BN = x_tm.shape[1]
    h0 = jnp.zeros((BN, H), jnp.float32)
    c0 = jnp.zeros((BN, H), jnp.float32)
    (hT, cT), outs = lax.scan(step, (h0, c0), x_tm)
    return outs, hT, cT


if __name__ == "__main__":
    # x: (batch, node_size, enc_seq_length, input_size)
    batch, node_size, seq_len, input_size, hidden_size = 2, 4, 8, 8, 32

    key = jax.random.PRNGKey(0)
    kx, kwih, kwhh, kbih, kbhh = jax.random.split(key, 5)

    x = jax.random.normal(kx, (batch, node_size, seq_len, input_size), jnp.float32)

    # Deterministic PyTorch-style LSTM init: U(-1/sqrt(H), 1/sqrt(H)), gates i,f,g,o.
    bound = 1.0 / jnp.sqrt(jnp.float32(hidden_size))
    w_ih = jax.random.uniform(kwih, (4 * hidden_size, input_size), jnp.float32, -bound, bound)
    w_hh = jax.random.uniform(kwhh, (4 * hidden_size, hidden_size), jnp.float32, -bound, bound)
    b_ih = jax.random.uniform(kbih, (4 * hidden_size,), jnp.float32, -bound, bound)
    b_hh = jax.random.uniform(kbhh, (4 * hidden_size,), jnp.float32, -bound, bound)

    # Kernel-friendly parameter layout.
    wx = w_ih.T                                        # (I, 4H)
    wh = w_hh.T                                        # (H, 4H)
    b = (b_ih + b_hh).reshape(1, 4 * hidden_size)      # (1, 4H)

    output, (h_n, c_n) = homo_encoder_forward(x, wx, wh, b)
    jax.block_until_ready((output, h_n, c_n))

    assert output.shape == (batch, node_size, seq_len, hidden_size)
    assert h_n.shape == (batch, node_size, hidden_size)
    assert c_n.shape == (batch, node_size, hidden_size)

    # Correctness check against a pure-JAX LSTM reference (matched precision).
    x_tm = jnp.transpose(x, (2, 0, 1, 3)).reshape(
        seq_len, batch * node_size, input_size)
    ref_out, ref_h, ref_c = _lstm_reference(x_tm, wx, wh, b)
    ref_out = jnp.transpose(
        ref_out.reshape(seq_len, batch, node_size, hidden_size), (1, 2, 0, 3))
    assert jnp.allclose(output, ref_out, atol=2e-3, rtol=2e-3)
    assert jnp.allclose(h_n, ref_h.reshape(batch, node_size, hidden_size),
                        atol=2e-3, rtol=2e-3)
    assert jnp.allclose(c_n, ref_c.reshape(batch, node_size, hidden_size),
                        atol=2e-3, rtol=2e-3)

    print("KERNEL_OK")
</pallas_src>

<mosaic_0001>
module attributes {stable_mosaic.version = 11 : i64} {
  func.func @_lstm_recurrence_kernel(%arg0: i32, %arg1: i32, %arg2: memref<8x1024xf32, #tpu.memory_space<vmem>>, %arg3: memref<32x128xbf16, #tpu.memory_space<vmem>>, %arg4: memref<8x256xf32, #tpu.memory_space<vmem>>, %arg5: memref<8x32xf32, #tpu.memory_space<vmem>>, %arg6: memref<8x32xf32, #tpu.memory_space<vmem>>, %arg7: memref<8x32xf32, #tpu.memory_space<vmem>>, %arg8: memref<8x32xf32, #tpu.memory_space<vmem>>) attributes {dimension_semantics = [#tpu.dimension_semantics<parallel>, #tpu.dimension_semantics<arbitrary>], iteration_bounds = array<i64: 1, 1>, scalar_prefetch = 0 : i64, scratch_operands = 2 : i64, tpu.core_type = #tpu.core_type<tc>, window_params = [{transform_indices = @transform_0, window_bounds = array<i64: 8, 1024>}, {pipeline_mode = #tpu.pipeline_mode<synchronous>, transform_indices = @transform_1, window_bounds = array<i64: 32, 128>}, {transform_indices = @transform_2, window_bounds = array<i64: 8, 256>}, {transform_indices = @transform_3, window_bounds = array<i64: 8, 32>}, {transform_indices = @transform_4, window_bounds = array<i64: 8, 32>}]} {
    %c0_i32 = arith.constant 0 : i32
    %0 = arith.cmpi eq, %arg1, %c0_i32 : i32
    %1 = arith.extui %0 : i1 to i32
    %c0_i32_0 = arith.constant 0 : i32
    %2 = arith.cmpi ne, %1, %c0_i32_0 : i32
    scf.if %2 {
      %cst_64 = arith.constant 0.000000e+00 : f32
      %250 = vector.broadcast %cst_64 : f32 to vector<8x32xf32>
      %c0_65 = arith.constant 0 : index
      %c0_66 = arith.constant 0 : index
      %251 = vector.load %arg7[%c0_65, %c0_66] : memref<8x32xf32, #tpu.memory_space<vmem>>, vector<8x32xf32>
      tpu.vector_store %arg7[%c0_65, %c0_66], %250 {strides = array<i32>} : memref<8x32xf32, #tpu.memory_space<vmem>>, vector<8x32xf32>,
      %cst_67 = arith.constant 0.000000e+00 : f32
      %252 = vector.broadcast %cst_67 : f32 to vector<8x32xf32>
      %c0_68 = arith.constant 0 : index
      %c0_69 = arith.constant 0 : index
      %253 = vector.load %arg8[%c0_68, %c0_69] : memref<8x32xf32, #tpu.memory_space<vmem>>, vector<8x32xf32>
      tpu.vector_store %arg8[%c0_68, %c0_69], %252 {strides = array<i32>} : memref<8x32xf32, #tpu.memory_space<vmem>>, vector<8x32xf32>,
    } else {
    }
    %c0 = arith.constant 0 : index
    %c0_1 = arith.constant 0 : index
    %3 = vector.load %arg7[%c0, %c0_1] : memref<8x32xf32, #tpu.memory_space<vmem>>, vector<8x32xf32>
    %c0_2 = arith.constant 0 : index
    %c0_3 = arith.constant 0 : index
    %4 = vector.load %arg8[%c0_2, %c0_3] : memref<8x32xf32, #tpu.memory_space<vmem>>, vector<8x32xf32>
    %c0_4 = arith.constant 0 : index
    %c0_5 = arith.constant 0 : index
    %5 = vector.load %arg3[%c0_4, %c0_5] : memref<32x128xbf16, #tpu.memory_space<vmem>>, vector<32x128xbf16>
    %c0_6 = arith.constant 0 : index
    %c0_7 = arith.constant 0 : index
    %6 = vector.load %arg2[%c0_6, %c0_7] : memref<8x1024xf32, #tpu.memory_space<vmem>>, vector<8x128xf32>
    %7 = arith.truncf %3 : vector<8x32xf32> to vector<8x32xbf16>
    %cst = arith.constant dense<0.000000e+00> : vector<8x128xf32>
    %8 = tpu.matmul %7, %5, %cst {dimension_numbers = #tpu.dot_dimension_numbers<[1], [0], [0], [1], [0, 0, 1, 1], [], []>} : vector<8x32xbf16>, vector<32x128xbf16>, vector<8x128xf32> -> vector<8x128xf32>
    %9 = arith.addf %6, %8 : vector<8x128xf32>
    %10 = vector.extract_strided_slice %9 {offsets = [0, 0], sizes = [8, 32], strides = [1, 1]} : vector<8x128xf32> to vector<8x32xf32>
    %11 = arith.negf %10 : vector<8x32xf32>
    %12 = math.exp %11 : vector<8x32xf32>
    %cst_8 = arith.constant 1.000000e+00 : f32
    %13 = vector.broadcast %cst_8 : f32 to vector<8x32xf32>
    %14 = arith.addf %13, %12 : vector<8x32xf32>
    %15 = arith.divf %13, %14 : vector<8x32xf32>
    %16 = vector.extract_strided_slice %9 {offsets = [0, 32], sizes = [8, 32], strides = [1, 1]} : vector<8x128xf32> to vector<8x32xf32>
    %17 = arith.negf %16 : vector<8x32xf32>
    %18 = math.exp %17 : vector<8x32xf32>
    %cst_9 = arith.constant 1.000000e+00 : f32
    %19 = vector.broadcast %cst_9 : f32 to vector<8x32xf32>
    %20 = arith.addf %19, %18 : vector<8x32xf32>
    %21 = arith.divf %19, %20 : vector<8x32xf32>
    %22 = vector.extract_strided_slice %9 {offsets = [0, 64], sizes = [8, 32], strides = [1, 1]} : vector<8x128xf32> to vector<8x32xf32>
    %23 = math.tanh %22 : vector<8x32xf32>
    %24 = vector.extract_strided_slice %9 {offsets = [0, 96], sizes = [8, 32], strides = [1, 1]} : vector<8x128xf32> to vector<8x32xf32>
    %25 = arith.negf %24 : vector<8x32xf32>
    %26 = math.exp %25 : vector<8x32xf32>
    %cst_10 = arith.constant 1.000000e+00 : f32
    %27 = vector.broadcast %cst_10 : f32 to vector<8x32xf32>
    %28 = arith.addf %27, %26 : vector<8x32xf32>
    %29 = arith.divf %27, %28 : vector<8x32xf32>
    %30 = arith.mulf %21, %4 : vector<8x32xf32>
    %31 = arith.mulf %15, %23 : vector<8x32xf32>
    %32 = arith.addf %30, %31 : vector<8x32xf32>
    %33 = math.tanh %32 : vector<8x32xf32>
    %34 = arith.mulf %29, %33 : vector<8x32xf32>
    %c0_11 = arith.constant 0 : index
    %c0_12 = arith.constant 0 : index
    %35 = vector.load %arg4[%c0_11, %c0_12] : memref<8x256xf32, #tpu.memory_space<vmem>>, vector<8x32xf32>
    tpu.vector_store %arg4[%c0_11, %c0_12], %34 {strides = array<i32>} : memref<8x256xf32, #tpu.memory_space<vmem>>, vector<8x32xf32>,
    %c0_13 = arith.constant 0 : index
    %c128 = arith.constant 128 : index
    %36 = vector.load %arg2[%c0_13, %c128] : memref<8x1024xf32, #tpu.memory_space<vmem>>, vector<8x128xf32>
    %37 = arith.truncf %34 : vector<8x32xf32> to vector<8x32xbf16>
    %cst_14 = arith.constant dense<0.000000e+00> : vector<8x128xf32>
    %38 = tpu.matmul %37, %5, %cst_14 {dimension_numbers = #tpu.dot_dimension_numbers<[1], [0], [0], [1], [0, 0, 1, 1], [], []>} : vector<8x32xbf16>, vector<32x128xbf16>, vector<8x128xf32> -> vector<8x128xf32>
    %39 = arith.addf %36, %38 : vector<8x128xf32>
    %40 = vector.extract_strided_slice %39 {offsets = [0, 0], sizes = [8, 32], strides = [1, 1]} : vector<8x128xf32> to vector<8x32xf32>
    %41 = arith.negf %40 : vector<8x32xf32>
    %42 = math.exp %41 : vector<8x32xf32>
    %cst_15 = arith.constant 1.000000e+00 : f32
    %43 = vector.broadcast %cst_15 : f32 to vector<8x32xf32>
    %44 = arith.addf %43, %42 : vector<8x32xf32>
    %45 = arith.divf %43, %44 : vector<8x32xf32>
    %46 = vector.extract_strided_slice %39 {offsets = [0, 32], sizes = [8, 32], strides = [1, 1]} : vector<8x128xf32> to vector<8x32xf32>
    %47 = arith.negf %46 : vector<8x32xf32>
    %48 = math.exp %47 : vector<8x32xf32>
    %cst_16 = arith.constant 1.000000e+00 : f32
    %49 = vector.broadcast %cst_16 : f32 to vector<8x32xf32>
    %50 = arith.addf %49, %48 : vector<8x32xf32>
    %51 = arith.divf %49, %50 : vector<8x32xf32>
    %52 = vector.extract_strided_slice %39 {offsets = [0, 64], sizes = [8, 32], strides = [1, 1]} : vector<8x128xf32> to vector<8x32xf32>
    %53 = math.tanh %52 : vector<8x32xf32>
    %54 = vector.extract_strided_slice %39 {offsets = [0, 96], sizes = [8, 32], strides = [1, 1]} : vector<8x128xf32> to vector<8x32xf32>
    %55 = arith.negf %54 : vector<8x32xf32>
    %56 = math.exp %55 : vector<8x32xf32>
    %cst_17 = arith.constant 1.000000e+00 : f32
    %57 = vector.broadcast %cst_17 : f32 to vector<8x32xf32>
    %58 = arith.addf %57, %56 : vector<8x32xf32>
    %59 = arith.divf %57, %58 : vector<8x32xf32>
    %60 = arith.mulf %51, %32 : vector<8x32xf32>
    %61 = arith.mulf %45, %53 : vector<8x32xf32>
    %62 = arith.addf %60, %61 : vector<8x32xf32>
    %63 = math.tanh %62 : vector<8x32xf32>
    %64 = arith.mulf %59, %63 : vector<8x32xf32>
    %c0_18 = arith.constant 0 : index
    %c32 = arith.constant 32 : index
    %65 = vector.load %arg4[%c0_18, %c32] : memref<8x256xf32, #tpu.memory_space<vmem>>, vector<8x32xf32>
    tpu.vector_store %arg4[%c0_18, %c32], %64 {strides = array<i32>} : memref<8x256xf32, #tpu.memory_space<vmem>>, vector<8x32xf32>,
    %c0_19 = arith.constant 0 : index
    %c256 = arith.constant 256 : index
    %66 = vector.load %arg2[%c0_19, %c256] : memref<8x1024xf32, #tpu.memory_space<vmem>>, vector<8x128xf32>
    %67 = arith.truncf %64 : vector<8x32xf32> to vector<8x32xbf16>
    %cst_20 = arith.constant dense<0.000000e+00> : vector<8x128xf32>
    %68 = tpu.matmul %67, %5, %cst_20 {dimension_numbers = #tpu.dot_dimension_numbers<[1], [0], [0], [1], [0, 0, 1, 1], [], []>} : vector<8x32xbf16>, vector<32x128xbf16>, vector<8x128xf32> -> vector<8x128xf32>
    %69 = arith.addf %66, %68 : vector<8x128xf32>
    %70 = vector.extract_strided_slice %69 {offsets = [0, 0], sizes = [8, 32], strides = [1, 1]} : vector<8x128xf32> to vector<8x32xf32>
    %71 = arith.negf %70 : vector<8x32xf32>
    %72 = math.exp %71 : vector<8x32xf32>
    %cst_21 = arith.constant 1.000000e+00 : f32
    %73 = vector.broadcast %cst_21 : f32 to vector<8x32xf32>
    %74 = arith.addf %73, %72 : vector<8x32xf32>
    %75 = arith.divf %73, %74 : vector<8x32xf32>
    %76 = vector.extract_strided_slice %69 {offsets = [0, 32], sizes = [8, 32], strides = [1, 1]} : vector<8x128xf32> to vector<8x32xf32>
    %77 = arith.negf %76 : vector<8x32xf32>
    %78 = math.exp %77 : vector<8x32xf32>
    %cst_22 = arith.constant 1.000000e+00 : f32
    %79 = vector.broadcast %cst_22 : f32 to vector<8x32xf32>
    %80 = arith.addf %79, %78 : vector<8x32xf32>
    %81 = arith.divf %79, %80 : vector<8x32xf32>
    %82 = vector.extract_strided_slice %69 {offsets = [0, 64], sizes = [8, 32], strides = [1, 1]} : vector<8x128xf32> to vector<8x32xf32>
    %83 = math.tanh %82 : vector<8x32xf32>
    %84 = vector.extract_strided_slice %69 {offsets = [0, 96], sizes = [8, 32], strides = [1, 1]} : vector<8x128xf32> to vector<8x32xf32>
    %85 = arith.negf %84 : vector<8x32xf32>
    %86 = math.exp %85 : vector<8x32xf32>
    %cst_23 = arith.constant 1.000000e+00 : f32
    %87 = vector.broadcast %cst_23 : f32 to vector<8x32xf32>
    %88 = arith.addf %87, %86 : vector<8x32xf32>
    %89 = arith.divf %87, %88 : vector<8x32xf32>
    %90 = arith.mulf %81, %62 : vector<8x32xf32>
    %91 = arith.mulf %75, %83 : vector<8x32xf32>
    %92 = arith.addf %90, %91 : vector<8x32xf32>
    %93 = math.tanh %92 : vector<8x32xf32>
    %94 = arith.mulf %89, %93 : vector<8x32xf32>
    %c0_24 = arith.constant 0 : index
    %c64 = arith.constant 64 : index
    %95 = vector.load %arg4[%c0_24, %c64] : memref<8x256xf32, #tpu.memory_space<vmem>>, vector<8x32xf32>
    tpu.vector_store %arg4[%c0_24, %c64], %94 {strides = array<i32>} : memref<8x256xf32, #tpu.memory_space<vmem>>, vector<8x32xf32>,
    %c0_25 = arith.constant 0 : index
    %c384 = arith.constant 384 : index
    %96 = vector.load %arg2[%c0_25, %c384] : memref<8x1024xf32, #tpu.memory_space<vmem>>, vector<8x128xf32>
    %97 = arith.truncf %94 : vector<8x32xf32> to vector<8x32xbf16>
    %cst_26 = arith.constant dense<0.000000e+00> : vector<8x128xf32>
    %98 = tpu.matmul %97, %5, %cst_26 {dimension_numbers = #tpu.dot_dimension_numbers<[1], [0], [0], [1], [0, 0, 1, 1], [], []>} : vector<8x32xbf16>, vector<32x128xbf16>, vector<8x128xf32> -> vector<8x128xf32>
    %99 = arith.addf %96, %98 : vector<8x128xf32>
    %100 = vector.extract_strided_slice %99 {offsets = [0, 0], sizes = [8, 32], strides = [1, 1]} : vector<8x128xf32> to vector<8x32xf32>
    %101 = arith.negf %100 : vector<8x32xf32>
    %102 = math.exp %101 : vector<8x32xf32>
    %cst_27 = arith.constant 1.000000e+00 : f32
    %103 = vector.broadcast %cst_27 : f32 to vector<8x32xf32>
    %104 = arith.addf %103, %102 : vector<8x32xf32>
    %105 = arith.divf %103, %104 : vector<8x32xf32>
    %106 = vector.extract_strided_slice %99 {offsets = [0, 32], sizes = [8, 32], strides = [1, 1]} : vector<8x128xf32> to vector<8x32xf32>
    %107 = arith.negf %106 : vector<8x32xf32>
    %108 = math.exp %107 : vector<8x32xf32>
    %cst_28 = arith.constant 1.000000e+00 : f32
    %109 = vector.broadcast %cst_28 : f32 to vector<8x32xf32>
    %110 = arith.addf %109, %108 : vector<8x32xf32>
    %111 = arith.divf %109, %110 : vector<8x32xf32>
    %112 = vector.extract_strided_slice %99 {offsets = [0, 64], sizes = [8, 32], strides = [1, 1]} : vector<8x128xf32> to vector<8x32xf32>
    %113 = math.tanh %112 : vector<8x32xf32>
    %114 = vector.extract_strided_slice %99 {offsets = [0, 96], sizes = [8, 32], strides = [1, 1]} : vector<8x128xf32> to vector<8x32xf32>
    %115 = arith.negf %114 : vector<8x32xf32>
    %116 = math.exp %115 : vector<8x32xf32>
    %cst_29 = arith.constant 1.000000e+00 : f32
    %117 = vector.broadcast %cst_29 : f32 to vector<8x32xf32>
    %118 = arith.addf %117, %116 : vector<8x32xf32>
    %119 = arith.divf %117, %118 : vector<8x32xf32>
    %120 = arith.mulf %111, %92 : vector<8x32xf32>
    %121 = arith.mulf %105, %113 : vector<8x32xf32>
    %122 = arith.addf %120, %121 : vector<8x32xf32>
    %123 = math.tanh %122 : vector<8x32xf32>
    %124 = arith.mulf %119, %123 : vector<8x32xf32>
    %c0_30 = arith.constant 0 : index
    %c96 = arith.constant 96 : index
    %125 = vector.load %arg4[%c0_30, %c96] : memref<8x256xf32, #tpu.memory_space<vmem>>, vector<8x32xf32>
    tpu.vector_store %arg4[%c0_30, %c96], %124 {strides = array<i32>} : memref<8x256xf32, #tpu.memory_space<vmem>>, vector<8x32xf32>,
    %c0_31 = arith.constant 0 : index
    %c512 = arith.constant 512 : index
    %126 = vector.load %arg2[%c0_31, %c512] : memref<8x1024xf32, #tpu.memory_space<vmem>>, vector<8x128xf32>
    %127 = arith.truncf %124 : vector<8x32xf32> to vector<8x32xbf16>
    %cst_32 = arith.constant dense<0.000000e+00> : vector<8x128xf32>
    %128 = tpu.matmul %127, %5, %cst_32 {dimension_numbers = #tpu.dot_dimension_numbers<[1], [0], [0], [1], [0, 0, 1, 1], [], []>} : vector<8x32xbf16>, vector<32x128xbf16>, vector<8x128xf32> -> vector<8x128xf32>
    %129 = arith.addf %126, %128 : vector<8x128xf32>
    %130 = vector.extract_strided_slice %129 {offsets = [0, 0], sizes = [8, 32], strides = [1, 1]} : vector<8x128xf32> to vector<8x32xf32>
    %131 = arith.negf %130 : vector<8x32xf32>
    %132 = math.exp %131 : vector<8x32xf32>
    %cst_33 = arith.constant 1.000000e+00 : f32
    %133 = vector.broadcast %cst_33 : f32 to vector<8x32xf32>
    %134 = arith.addf %133, %132 : vector<8x32xf32>
    %135 = arith.divf %133, %134 : vector<8x32xf32>
    %136 = vector.extract_strided_slice %129 {offsets = [0, 32], sizes = [8, 32], strides = [1, 1]} : vector<8x128xf32> to vector<8x32xf32>
    %137 = arith.negf %136 : vector<8x32xf32>
    %138 = math.exp %137 : vector<8x32xf32>
    %cst_34 = arith.constant 1.000000e+00 : f32
    %139 = vector.broadcast %cst_34 : f32 to vector<8x32xf32>
    %140 = arith.addf %139, %138 : vector<8x32xf32>
    %141 = arith.divf %139, %140 : vector<8x32xf32>
    %142 = vector.extract_strided_slice %129 {offsets = [0, 64], sizes = [8, 32], strides = [1, 1]} : vector<8x128xf32> to vector<8x32xf32>
    %143 = math.tanh %142 : vector<8x32xf32>
    %144 = vector.extract_strided_slice %129 {offsets = [0, 96], sizes = [8, 32], strides = [1, 1]} : vector<8x128xf32> to vector<8x32xf32>
    %145 = arith.negf %144 : vector<8x32xf32>
    %146 = math.exp %145 : vector<8x32xf32>
    %cst_35 = arith.constant 1.000000e+00 : f32
    %147 = vector.broadcast %cst_35 : f32 to vector<8x32xf32>
    %148 = arith.addf %147, %146 : vector<8x32xf32>
    %149 = arith.divf %147, %148 : vector<8x32xf32>
    %150 = arith.mulf %141, %122 : vector<8x32xf32>
    %151 = arith.mulf %135, %143 : vector<8x32xf32>
    %152 = arith.addf %150, %151 : vector<8x32xf32>
    %153 = math.tanh %152 : vector<8x32xf32>
    %154 = arith.mulf %149, %153 : vector<8x32xf32>
    %c0_36 = arith.constant 0 : index
    %c128_37 = arith.constant 128 : index
    %155 = vector.load %arg4[%c0_36, %c128_37] : memref<8x256xf32, #tpu.memory_space<vmem>>, vector<8x32xf32>
    tpu.vector_store %arg4[%c0_36, %c128_37], %154 {strides = array<i32>} : memref<8x256xf32, #tpu.memory_space<vmem>>, vector<8x32xf32>,
    %c0_38 = arith.constant 0 : index
    %c640 = arith.constant 640 : index
    %156 = vector.load %arg2[%c0_38, %c640] : memref<8x1024xf32, #tpu.memory_space<vmem>>, vector<8x128xf32>
    %157 = arith.truncf %154 : vector<8x32xf32> to vector<8x32xbf16>
    %cst_39 = arith.constant dense<0.000000e+00> : vector<8x128xf32>
    %158 = tpu.matmul %157, %5, %cst_39 {dimension_numbers = #tpu.dot_dimension_numbers<[1], [0], [0], [1], [0, 0, 1, 1], [], []>} : vector<8x32xbf16>, vector<32x128xbf16>, vector<8x128xf32> -> vector<8x128xf32>
    %159 = arith.addf %156, %158 : vector<8x128xf32>
    %160 = vector.extract_strided_slice %159 {offsets = [0, 0], sizes = [8, 32], strides = [1, 1]} : vector<8x128xf32> to vector<8x32xf32>
    %161 = arith.negf %160 : vector<8x32xf32>
    %162 = math.exp %161 : vector<8x32xf32>
    %cst_40 = arith.constant 1.000000e+00 : f32
    %163 = vector.broadcast %cst_40 : f32 to vector<8x32xf32>
    %164 = arith.addf %163, %162 : vector<8x32xf32>
    %165 = arith.divf %163, %164 : vector<8x32xf32>
    %166 = vector.extract_strided_slice %159 {offsets = [0, 32], sizes = [8, 32], strides = [1, 1]} : vector<8x128xf32> to vector<8x32xf32>
    %167 = arith.negf %166 : vector<8x32xf32>
    %168 = math.exp %167 : vector<8x32xf32>
    %cst_41 = arith.constant 1.000000e+00 : f32
    %169 = vector.broadcast %cst_41 : f32 to vector<8x32xf32>
    %170 = arith.addf %169, %168 : vector<8x32xf32>
    %171 = arith.divf %169, %170 : vector<8x32xf32>
    %172 = vector.extract_strided_slice %159 {offsets = [0, 64], sizes = [8, 32], strides = [1, 1]} : vector<8x128xf32> to vector<8x32xf32>
    %173 = math.tanh %172 : vector<8x32xf32>
    %174 = vector.extract_strided_slice %159 {offsets = [0, 96], sizes = [8, 32], strides = [1, 1]} : vector<8x128xf32> to vector<8x32xf32>
    %175 = arith.negf %174 : vector<8x32xf32>
    %176 = math.exp %175 : vector<8x32xf32>
    %cst_42 = arith.constant 1.000000e+00 : f32
    %177 = vector.broadcast %cst_42 : f32 to vector<8x32xf32>
    %178 = arith.addf %177, %176 : vector<8x32xf32>
    %179 = arith.divf %177, %178 : vector<8x32xf32>
    %180 = arith.mulf %171, %152 : vector<8x32xf32>
    %181 = arith.mulf %165, %173 : vector<8x32xf32>
    %182 = arith.addf %180, %181 : vector<8x32xf32>
    %183 = math.tanh %182 : vector<8x32xf32>
    %184 = arith.mulf %179, %183 : vector<8x32xf32>
    %c0_43 = arith.constant 0 : index
    %c160 = arith.constant 160 : index
    %185 = vector.load %arg4[%c0_43, %c160] : memref<8x256xf32, #tpu.memory_space<vmem>>, vector<8x32xf32>
    tpu.vector_store %arg4[%c0_43, %c160], %184 {strides = array<i32>} : memref<8x256xf32, #tpu.memory_space<vmem>>, vector<8x32xf32>,
    %c0_44 = arith.constant 0 : index
    %c768 = arith.constant 768 : index
    %186 = vector.load %arg2[%c0_44, %c768] : memref<8x1024xf32, #tpu.memory_space<vmem>>, vector<8x128xf32>
    %187 = arith.truncf %184 : vector<8x32xf32> to vector<8x32xbf16>
    %cst_45 = arith.constant dense<0.000000e+00> : vector<8x128xf32>
    %188 = tpu.matmul %187, %5, %cst_45 {dimension_numbers = #tpu.dot_dimension_numbers<[1], [0], [0], [1], [0, 0, 1, 1], [], []>} : vector<8x32xbf16>, vector<32x128xbf16>, vector<8x128xf32> -> vector<8x128xf32>
    %189 = arith.addf %186, %188 : vector<8x128xf32>
    %190 = vector.extract_strided_slice %189 {offsets = [0, 0], sizes = [8, 32], strides = [1, 1]} : vector<8x128xf32> to vector<8x32xf32>
    %191 = arith.negf %190 : vector<8x32xf32>
    %192 = math.exp %191 : vector<8x32xf32>
    %cst_46 = arith.constant 1.000000e+00 : f32
    %193 = vector.broadcast %cst_46 : f32 to vector<8x32xf32>
    %194 = arith.addf %193, %192 : vector<8x32xf32>
    %195 = arith.divf %193, %194 : vector<8x32xf32>
    %196 = vector.extract_strided_slice %189 {offsets = [0, 32], sizes = [8, 32], strides = [1, 1]} : vector<8x128xf32> to vector<8x32xf32>
    %197 = arith.negf %196 : vector<8x32xf32>
    %198 = math.exp %197 : vector<8x32xf32>
    %cst_47 = arith.constant 1.000000e+00 : f32
    %199 = vector.broadcast %cst_47 : f32 to vector<8x32xf32>
    %200 = arith.addf %199, %198 : vector<8x32xf32>
    %201 = arith.divf %199, %200 : vector<8x32xf32>
    %202 = vector.extract_strided_slice %189 {offsets = [0, 64], sizes = [8, 32], strides = [1, 1]} : vector<8x128xf32> to vector<8x32xf32>
    %203 = math.tanh %202 : vector<8x32xf32>
    %204 = vector.extract_strided_slice %189 {offsets = [0, 96], sizes = [8, 32], strides = [1, 1]} : vector<8x128xf32> to vector<8x32xf32>
    %205 = arith.negf %204 : vector<8x32xf32>
    %206 = math.exp %205 : vector<8x32xf32>
    %cst_48 = arith.constant 1.000000e+00 : f32
    %207 = vector.broadcast %cst_48 : f32 to vector<8x32xf32>
    %208 = arith.addf %207, %206 : vector<8x32xf32>
    %209 = arith.divf %207, %208 : vector<8x32xf32>
    %210 = arith.mulf %201, %182 : vector<8x32xf32>
    %211 = arith.mulf %195, %203 : vector<8x32xf32>
    %212 = arith.addf %210, %211 : vector<8x32xf32>
    %213 = math.tanh %212 : vector<8x32xf32>
    %214 = arith.mulf %209, %213 : vector<8x32xf32>
    %c0_49 = arith.constant 0 : index
    %c192 = arith.constant 192 : index
    %215 = vector.load %arg4[%c0_49, %c192] : memref<8x256xf32, #tpu.memory_space<vmem>>, vector<8x32xf32>
    tpu.vector_store %arg4[%c0_49, %c192], %214 {strides = array<i32>} : memref<8x256xf32, #tpu.memory_space<vmem>>, vector<8x32xf32>,
    %c0_50 = arith.constant 0 : index
    %c896 = arith.constant 896 : index
    %216 = vector.load %arg2[%c0_50, %c896] : memref<8x1024xf32, #tpu.memory_space<vmem>>, vector<8x128xf32>
    %217 = arith.truncf %214 : vector<8x32xf32> to vector<8x32xbf16>
    %cst_51 = arith.constant dense<0.000000e+00> : vector<8x128xf32>
    %218 = tpu.matmul %217, %5, %cst_51 {dimension_numbers = #tpu.dot_dimension_numbers<[1], [0], [0], [1], [0, 0, 1, 1], [], []>} : vector<8x32xbf16>, vector<32x128xbf16>, vector<8x128xf32> -> vector<8x128xf32>
    %219 = arith.addf %216, %218 : vector<8x128xf32>
    %220 = vector.extract_strided_slice %219 {offsets = [0, 0], sizes = [8, 32], strides = [1, 1]} : vector<8x128xf32> to vector<8x32xf32>
    %221 = arith.negf %220 : vector<8x32xf32>
    %222 = math.exp %221 : vector<8x32xf32>
    %cst_52 = arith.constant 1.000000e+00 : f32
    %223 = vector.broadcast %cst_52 : f32 to vector<8x32xf32>
    %224 = arith.addf %223, %222 : vector<8x32xf32>
    %225 = arith.divf %223, %224 : vector<8x32xf32>
    %226 = vector.extract_strided_slice %219 {offsets = [0, 32], sizes = [8, 32], strides = [1, 1]} : vector<8x128xf32> to vector<8x32xf32>
    %227 = arith.negf %226 : vector<8x32xf32>
    %228 = math.exp %227 : vector<8x32xf32>
    %cst_53 = arith.constant 1.000000e+00 : f32
    %229 = vector.broadcast %cst_53 : f32 to vector<8x32xf32>
    %230 = arith.addf %229, %228 : vector<8x32xf32>
    %231 = arith.divf %229, %230 : vector<8x32xf32>
    %232 = vector.extract_strided_slice %219 {offsets = [0, 64], sizes = [8, 32], strides = [1, 1]} : vector<8x128xf32> to vector<8x32xf32>
    %233 = math.tanh %232 : vector<8x32xf32>
    %234 = vector.extract_strided_slice %219 {offsets = [0, 96], sizes = [8, 32], strides = [1, 1]} : vector<8x128xf32> to vector<8x32xf32>
    %235 = arith.negf %234 : vector<8x32xf32>
    %236 = math.exp %235 : vector<8x32xf32>
    %cst_54 = arith.constant 1.000000e+00 : f32
    %237 = vector.broadcast %cst_54 : f32 to vector<8x32xf32>
    %238 = arith.addf %237, %236 : vector<8x32xf32>
    %239 = arith.divf %237, %238 : vector<8x32xf32>
    %240 = arith.mulf %231, %212 : vector<8x32xf32>
    %241 = arith.mulf %225, %233 : vector<8x32xf32>
    %242 = arith.addf %240, %241 : vector<8x32xf32>
    %243 = math.tanh %242 : vector<8x32xf32>
    %244 = arith.mulf %239, %243 : vector<8x32xf32>
    %c0_55 = arith.constant 0 : index
    %c224 = arith.constant 224 : index
    %245 = vector.load %arg4[%c0_55, %c224] : memref<8x256xf32, #tpu.memory_space<vmem>>, vector<8x32xf32>
    tpu.vector_store %arg4[%c0_55, %c224], %244 {strides = array<i32>} : memref<8x256xf32, #tpu.memory_space<vmem>>, vector<8x32xf32>,
    %c0_56 = arith.constant 0 : index
    %c0_57 = arith.constant 0 : index
    %246 = vector.load %arg7[%c0_56, %c0_57] : memref<8x32xf32, #tpu.memory_space<vmem>>, vector<8x32xf32>
    tpu.vector_store %arg7[%c0_56, %c0_57], %244 {strides = array<i32>} : memref<8x32xf32, #tpu.memory_space<vmem>>, vector<8x32xf32>,
    %c0_58 = arith.constant 0 : index
    %c0_59 = arith.constant 0 : index
    %247 = vector.load %arg8[%c0_58, %c0_59] : memref<8x32xf32, #tpu.memory_space<vmem>>, vector<8x32xf32>
    tpu.vector_store %arg8[%c0_58, %c0_59], %242 {strides = array<i32>} : memref<8x32xf32, #tpu.memory_space<vmem>>, vector<8x32xf32>,
    %c0_60 = arith.constant 0 : index
    %c0_61 = arith.constant 0 : index
    %248 = vector.load %arg5[%c0_60, %c0_61] : memref<8x32xf32, #tpu.memory_space<vmem>>, vector<8x32xf32>
    tpu.vector_store %arg5[%c0_60, %c0_61], %244 {strides = array<i32>} : memref<8x32xf32, #tpu.memory_space<vmem>>, vector<8x32xf32>,
    %c0_62 = arith.constant 0 : index
    %c0_63 = arith.constant 0 : index
    %249 = vector.load %arg6[%c0_62, %c0_63] : memref<8x32xf32, #tpu.memory_space<vmem>>, vector<8x32xf32>
    tpu.vector_store %arg6[%c0_62, %c0_63], %242 {strides = array<i32>} : memref<8x32xf32, #tpu.memory_space<vmem>>, vector<8x32xf32>,
    return
  }
  func.func @transform_0(%arg0: i32, %arg1: i32) -> (i32, i32) {
    %c0_i32 = arith.constant 0 : i32
    return %arg0, %arg1 : i32, i32
  }
  func.func @transform_1(%arg0: i32, %arg1: i32) -> (i32, i32) {
    %c0_i32 = arith.constant 0 : i32
    %c0_i32_0 = arith.constant 0 : i32
    %c0_i32_1 = arith.constant 0 : i32
    return %c0_i32, %c0_i32_0 : i32, i32
  }
  func.func @transform_2(%arg0: i32, %arg1: i32) -> (i32, i32) {
    %c0_i32 = arith.constant 0 : i32
    return %arg0, %arg1 : i32, i32
  }
  func.func @transform_3(%arg0: i32, %arg1: i32) -> (i32, i32) {
    %c0_i32 = arith.constant 0 : i32
    %c0_i32_0 = arith.constant 0 : i32
    return %arg0, %c0_i32 : i32, i32
  }
  func.func @transform_4(%arg0: i32, %arg1: i32) -> (i32, i32) {
    %c0_i32 = arith.constant 0 : i32
    %c0_i32_0 = arith.constant 0 : i32
    return %arg0, %c0_i32 : i32, i32
  }
}

</mosaic_0001>

<bundles_post_ra>
// kernel: homo_encoder_forward.1
= control target key start
LH: loop header
LB: loop body
LE: loop exit
PB: predicated region body
PF: predicated region fallthrough
CT: control target
= control target key end

     0   :  { %10 = vsyncpa [#allocation5], 0  ;;  %v930_v1 = vmov 0.0   ;;  %vm931_vm0 = vmmov 0   ;;  %vm21_vm1 = vcmask 261120   ;;  %s1165_s0 = inlined_call_operand.vmem [shape: f32[8,1024], index: 0, kind: input, shape index: {}]   ;;  %s1166_s1 = inlined_call_operand.vmem [shape: bf16[32,128], index: 1, kind: input, shape index: {}]   ;;  %s1167_s2 = inlined_call_operand.vmem [shape: f32[8,256], index: 2, kind: output, shape index: {0}]   ;;  %s1168_s3 = inlined_call_operand.hbm [shape: f32[8,32], index: 3, kind: output, shape index: {1}]   ;;  %s1169_s4 = inlined_call_operand.hbm [shape: f32[8,32], index: 4, kind: output, shape index: {2}]  }
   0x1   :  { %v965_v0 = vld [vmem:[%s1166_s1 + $0x8] sm:$0xff]   ;;  %749 = vmatprep.subr.bf16.mxu0 %v930_v1  ;;  %757 = vmatprep.subr.bf16.mxu1 %v930_v1  ;;  %v973_v2 = vld [vmem:[%s1166_s1] sm:$0xff]  }
   0x2   :  { %750 = vmatpush3.bf16.msra.mxu0 %v965_v0  ;;  %753 = vmatprep.mubr.msk.bf16.mxu0 %vm931_vm0, %v930_v1 }
   0x3   :  { %11 = vsyncpa [#allocation7], 0  ;;  %751 = vmatprep.subr.bf16.mxu0 %v930_v1  ;;  %22 = vst.msk [vmem:[#allocation2] sm:$0xff] %vm21_vm1, %v930_v1  ;;  %758 = vmatpush3.bf16.msra.mxu1 %v965_v0  ;;  %v30_v5 = vld [vmem:[%s1165_s0] sm:$0xff]  ;;  %s932_s20 = smov 64   ;;  %s933_s21 = smov 32  }
   0x4   :  { %23 = vst.msk [vmem:[#allocation3] sm:$0xff] %vm21_vm1, %v930_v1  ;;  %759 = vmatprep.subr.bf16.mxu1 %v930_v1  ;;  %761 = vmatprep.mubr.msk.bf16.mxu1 %vm931_vm0, %v930_v1  ;;  %v122_v28 = vld [vmem:[%s1165_s0 + $0x8] sm:$0xff]  ;;  %v201_v49 = vld [vmem:[%s1165_s0 + $0x10] sm:$0xff]  ;;  %vm199_vm2 = vcmask 523520   ;;  %vm278_vm3 = vcmask 785920   ;;  %vm353_vm4 = vcmask 1048320  }
   0x6   :  { %752 = vmatpush3.bf16.msra.mxu0 %v973_v2 }
   0x7   :  { %760 = vmatpush3.bf16.msra.mxu1 %v973_v2  ;;  %765 = vmatprep.subr.bf16.mxu0 %v930_v1 }
   0x8   :  { %773 = vmatprep.subr.bf16.mxu1 %v930_v1 }
   0xa   :  { %v24_v3 = vld [vmem:[#allocation2] sm:$0xff] }
   0xb   :  { %v31_v4 = vpack.c.bf16 %v24_v3, %v24_v3  ;;  %v25_v12 = vld [vmem:[#allocation3] sm:$0xff] }
   0xd   :  { %754 = vmatmul.mubr.msk.bf16.vlgmr.msra.gmra.mxu0 %vm21_vm1, %v31_v4 }
   0xe   :  { %766 = vmatpush3.bf16.msra.mxu0 %v965_v0  ;;  %769 = vmatprep.mubr.msk.bf16.mxu0 %vm931_vm0, %v930_v1 }
   0xf   :  { %767 = vmatprep.subr.bf16.mxu0 %v930_v1 }
  0x12   :  { %768 = vmatpush3.bf16.msra.mxu0 %v973_v2 }
  0x13   :  { %781 = vmatprep.subr.bf16.mxu0 %v930_v1 }
  0xcd   :  { %v82_v6 = vpop.f32.mrf.mxu0 }
  0xce   :  { %v88_v7 = vadd.f32 %v82_v6, %v30_v5 }
  0xcf   :  { %v755_v8 = vpop.f32.mrf.mxu0 }
  0xd0   :  { %822 = vtanh.f32 %v88_v7  ;;  %v710_v13 = vmul.f32 -1.442695, %v88_v7 }
  0xd1   :  { %v85_v9 = vpop.f32.mrf.mxu0 }
  0xd2   :  { %824 = vpow2.f32 %v710_v13  ;;  %v280_v9 = vld [vmem:[%s1165_s0 + $0x18] sm:$0xff] }
  0xd3   :  { %v756_v10 = vpop.f32.mrf.mxu0 }
  0xdd   :  { %v823_v11 = vpop.eup %822 }
  0xde   :  { %102 = vrot.lane.b32.xlu0 %v823_v11, %s932_s20 }
  0xdf   :  { %v825_v14 = vpop.eup %824 }
  0xe0   :  { %v92_v15 = vadd.f32 1.0, %v825_v14 }
  0xe2   :  { %97 = vrot.lane.b32.xlu0 %v25_v12, %s933_s21  ;;  %826 = vrcp.f32 %v92_v15 }
  0xef   :  { %v827_v16 = vpop.eup %826 }
 0x150   :  { %v103_v17 = vpop.permute.xlu0 %102 }
 0x151   :  { %v105_v18 = vmul.f32 %v827_v16, %v103_v17 }
 0x153   :  { %107 = vrot.lane.b32.xlu1 %v105_v18, %s933_s21 }
 0x154   :  { %v98_v19 = vpop.permute.xlu0 %97 }
 0x155   :  { %v100_v20 = vmul.f32 %v827_v16, %v98_v19 }
 0x1c5   :  { %v108_v21 = vpop.permute.xlu1 %107 }
 0x1c6   :  { %v110_v22 = vadd.f32 %v108_v21, %v100_v20 }
 0x1c8   :  { %828 = vtanh.f32 %v110_v22 }
 0x1d5   :  { %v829_v23 = vpop.eup %828 }
 0x1d6   :  { %113 = vrot.lane.b32.xlu1 %v829_v23, %s932_s20 }
 0x248   :  { %v114_v24 = vpop.permute.xlu1 %113 }
 0x249   :  { %v1004_v25 = vmul.f32 %v827_v16, %v114_v24 }
 0x24b   :  { %v123_v26 = vpack.c.bf16 %v1004_v25, %v1004_v25 }
 0x24d   :  { %125 = vrot.lane.b32.xlu0 %v123_v26, %s933_s21 }
 0x2bf   :  { %v126_v27 = vpop.permute.xlu0 %125 }
 0x2c0   :  { %762 = vmatmul.mubr.msk.bf16.vlgmr.msra.gmra.mxu1 %vm21_vm1, %v126_v27 }
 0x2c1   :  { %774 = vmatpush3.bf16.msra.mxu1 %v965_v0  ;;  %777 = vmatprep.mubr.msk.bf16.mxu1 %vm931_vm0, %v930_v1 }
 0x2c2   :  { %775 = vmatprep.subr.bf16.mxu1 %v930_v1 }
 0x2c5   :  { %776 = vmatpush3.bf16.msra.mxu1 %v973_v2 }
 0x2c6   :  { %789 = vmatprep.subr.bf16.mxu1 %v930_v1 }
 0x380   :  { %v164_v29 = vpop.f32.mrf.mxu1 }
 0x381   :  { %v170_v30 = vadd.f32 %v164_v29, %v122_v28 }
 0x382   :  { %v763_v31 = vpop.f32.mrf.mxu1 }
 0x383   :  { %830 = vtanh.f32 %v170_v30  ;;  %v712_v35 = vmul.f32 -1.442695, %v170_v30  ;;  %v355_v31 = vld [vmem:[%s1165_s0 + $0x20] sm:$0xff] }
 0x384   :  { %v167_v32 = vpop.f32.mrf.mxu1 }
 0x385   :  { %832 = vpow2.f32 %v712_v35 }
 0x386   :  { %v764_v33 = vpop.f32.mrf.mxu1 }
 0x390   :  { %v831_v34 = vpop.eup %830 }
 0x391   :  { %180 = vrot.lane.b32.xlu1 %v831_v34, %s932_s20 }
 0x392   :  { %v833_v36 = vpop.eup %832 }
 0x393   :  { %v174_v37 = vadd.f32 1.0, %v833_v36 }
 0x395   :  { %834 = vrcp.f32 %v174_v37 }
 0x3a2   :  { %v835_v38 = vpop.eup %834 }
 0x3a3   :  { %v178_v41 = vmul.f32 %v835_v38, %v110_v22 }
 0x403   :  { %v181_v39 = vpop.permute.xlu1 %180 }
 0x404   :  { %v183_v40 = vmul.f32 %v835_v38, %v181_v39 }
 0x406   :  { %185 = vrot.lane.b32.xlu0 %v183_v40, %s933_s21 }
 0x478   :  { %v186_v42 = vpop.permute.xlu0 %185 }
 0x479   :  { %v188_v43 = vadd.f32 %v186_v42, %v178_v41 }
 0x47b   :  { %836 = vtanh.f32 %v188_v43 }
 0x488   :  { %v837_v44 = vpop.eup %836 }
 0x489   :  { %191 = vrot.lane.b32.xlu1 %v837_v44, %s932_s20 }
 0x4fb   :  { %v192_v45 = vpop.permute.xlu1 %191 }
 0x4fc   :  { %v1022_v46 = vmul.f32 %v835_v38, %v192_v45 }
 0x4fe   :  { %v202_v47 = vpack.c.bf16 %v1022_v46, %v1022_v46 }
 0x500   :  { %204 = vrot.lane.b32.xlu0 %v202_v47, %s933_s21 }
 0x572   :  { %v205_v48 = vpop.permute.xlu0 %204 }
 0x573   :  { %770 = vmatmul.mubr.msk.bf16.vlgmr.msra.gmra.mxu0 %vm21_vm1, %v205_v48 }
 0x574   :  { %782 = vmatpush3.bf16.msra.mxu0 %v965_v0  ;;  %785 = vmatprep.mubr.msk.bf16.mxu0 %vm931_vm0, %v930_v1 }
 0x575   :  { %783 = vmatprep.subr.bf16.mxu0 %v930_v1 }
 0x578   :  { %784 = vmatpush3.bf16.msra.mxu0 %v973_v2 }
 0x579   :  { %797 = vmatprep.subr.bf16.mxu0 %v930_v1 }
 0x633   :  { %v243_v50 = vpop.f32.mrf.mxu0 }
 0x634   :  { %v249_v51 = vadd.f32 %v243_v50, %v201_v49 }
 0x635   :  { %v771_v52 = vpop.f32.mrf.mxu0 }
 0x636   :  { %838 = vtanh.f32 %v249_v51  ;;  %v714_v56 = vmul.f32 -1.442695, %v249_v51 }
 0x637   :  { %v246_v53 = vpop.f32.mrf.mxu0 }
 0x638   :  { %840 = vpow2.f32 %v714_v56  ;;  %v433_v53 = vld [vmem:[%s1165_s0 + $0x28] sm:$0xff] }
 0x639   :  { %v772_v54 = vpop.f32.mrf.mxu0 }
 0x643   :  { %v839_v55 = vpop.eup %838 }
 0x644   :  { %259 = vrot.lane.b32.xlu1 %v839_v55, %s932_s20 }
 0x645   :  { %v841_v57 = vpop.eup %840 }
 0x646   :  { %v253_v58 = vadd.f32 1.0, %v841_v57 }
 0x648   :  { %842 = vrcp.f32 %v253_v58 }
 0x655   :  { %v843_v59 = vpop.eup %842 }
 0x656   :  { %v257_v62 = vmul.f32 %v843_v59, %v188_v43 }
 0x6b6   :  { %v260_v60 = vpop.permute.xlu1 %259 }
 0x6b7   :  { %v262_v61 = vmul.f32 %v843_v59, %v260_v60 }
 0x6b9   :  { %264 = vrot.lane.b32.xlu0 %v262_v61, %s933_s21 }
 0x72b   :  { %v265_v63 = vpop.permute.xlu0 %264 }
 0x72c   :  { %v267_v3 = vadd.f32 %v265_v63, %v257_v62 }
 0x72e   :  { %844 = vtanh.f32 %v267_v3 }
 0x73b   :  { %v845_v4 = vpop.eup %844 }
 0x73c   :  { %270 = vrot.lane.b32.xlu1 %v845_v4, %s932_s20 }
 0x7ae   :  { %v271_v5 = vpop.permute.xlu1 %270 }
 0x7af   :  { %v1040_v6 = vmul.f32 %v843_v59, %v271_v5 }
 0x7b1   :  { %v281_v7 = vpack.c.bf16 %v1040_v6, %v1040_v6 }
 0x7b3   :  { %283 = vrot.lane.b32.xlu0 %v281_v7, %s933_s21 }
 0x825   :  { %v284_v8 = vpop.permute.xlu0 %283 }
 0x826   :  { %778 = vmatmul.mubr.msk.bf16.vlgmr.msra.gmra.mxu1 %vm21_vm1, %v284_v8 }
 0x827   :  { %790 = vmatpush3.bf16.msra.mxu1 %v965_v0  ;;  %793 = vmatprep.mubr.msk.bf16.mxu1 %vm931_vm0, %v930_v1 }
 0x828   :  { %791 = vmatprep.subr.bf16.mxu1 %v930_v1 }
 0x82b   :  { %792 = vmatpush3.bf16.msra.mxu1 %v973_v2 }
 0x82c   :  { %805 = vmatprep.subr.bf16.mxu1 %v930_v1 }
 0x8e6   :  { %v322_v10 = vpop.f32.mrf.mxu1 }
 0x8e7   :  { %v328_v11 = vadd.f32 %v322_v10, %v280_v9 }
 0x8e8   :  { %v779_v12 = vpop.f32.mrf.mxu1 }
 0x8e9   :  { %846 = vtanh.f32 %v328_v11  ;;  %v716_v16 = vmul.f32 -1.442695, %v328_v11  ;;  %v511_v11 = vld [vmem:[%s1165_s0 + $0x30] sm:$0xff] }
 0x8ea   :  { %v325_v13 = vpop.f32.mrf.mxu1 }
 0x8eb   :  { %848 = vpow2.f32 %v716_v16 }
 0x8ec   :  { %v780_v14 = vpop.f32.mrf.mxu1 }
 0x8f6   :  { %v847_v15 = vpop.eup %846 }
 0x8f7   :  { %338 = vrot.lane.b32.xlu1 %v847_v15, %s932_s20 }
 0x8f8   :  { %v849_v17 = vpop.eup %848 }
 0x8f9   :  { %v332_v18 = vadd.f32 1.0, %v849_v17 }
 0x8fb   :  { %850 = vrcp.f32 %v332_v18 }
 0x908   :  { %v851_v19 = vpop.eup %850 }
 0x909   :  { %v336_v22 = vmul.f32 %v851_v19, %v267_v3 }
 0x969   :  { %v339_v20 = vpop.permute.xlu1 %338 }
 0x96a   :  { %v341_v21 = vmul.f32 %v851_v19, %v339_v20 }
 0x96c   :  { %343 = vrot.lane.b32.xlu0 %v341_v21, %s933_s21 }
 0x9de   :  { %v344_v23 = vpop.permute.xlu0 %343 }
 0x9df   :  { %v346_v24 = vadd.f32 %v344_v23, %v336_v22 }
 0x9e1   :  { %852 = vtanh.f32 %v346_v24 }
 0x9ee   :  { %v853_v26 = vpop.eup %852 }
 0x9ef   :  { %349 = vrot.lane.b32.xlu1 %v853_v26, %s932_s20 }
 0xa61   :  { %v350_v27 = vpop.permute.xlu1 %349 }
 0xa62   :  { %v1058_v28 = vmul.f32 %v851_v19, %v350_v27 }
 0xa64   :  { %v356_v29 = vpack.c.bf16 %v1058_v28, %v1058_v28 }
 0xa66   :  { %358 = vrot.lane.b32.xlu0 %v356_v29, %s933_s21 }
 0xad8   :  { %v359_v30 = vpop.permute.xlu0 %358 }
 0xad9   :  { %786 = vmatmul.mubr.msk.bf16.vlgmr.msra.gmra.mxu0 %vm21_vm1, %v359_v30 }
 0xada   :  { %798 = vmatpush3.bf16.msra.mxu0 %v965_v0  ;;  %801 = vmatprep.mubr.msk.bf16.mxu0 %vm931_vm0, %v930_v1 }
 0xadb   :  { %799 = vmatprep.subr.bf16.mxu0 %v930_v1 }
 0xade   :  { %800 = vmatpush3.bf16.msra.mxu0 %v973_v2 }
 0xb99   :  { %v397_v32 = vpop.f32.mrf.mxu0 }
 0xb9a   :  { %v403_v33 = vadd.f32 %v397_v32, %v355_v31 }
 0xb9b   :  { %v787_v34 = vpop.f32.mrf.mxu0 }
 0xb9c   :  { %854 = vtanh.f32 %v403_v33  ;;  %v718_v38 = vmul.f32 -1.442695, %v403_v33  ;;  %v589_v34 = vld [vmem:[%s1165_s0 + $0x38] sm:$0xff]  ;;  %s934_s0 = smov 96  }
 0xb9d   :  { %v400_v35 = vpop.f32.mrf.mxu0 }
 0xb9e   :  { %856 = vpow2.f32 %v718_v38 }
 0xb9f   :  { %v788_v36 = vpop.f32.mrf.mxu0 }
 0xba9   :  { %v855_v37 = vpop.eup %854 }
 0xbaa   :  { %413 = vrot.lane.b32.xlu1 %v855_v37, %s932_s20 }
 0xbab   :  { %v857_v39 = vpop.eup %856 }
 0xbac   :  { %v407_v40 = vadd.f32 1.0, %v857_v39 }
 0xbae   :  { %858 = vrcp.f32 %v407_v40 }
 0xbbb   :  { %v859_v41 = vpop.eup %858 }
 0xbbc   :  { %v411_v44 = vmul.f32 %v859_v41, %v346_v24 }
 0xc1c   :  { %v414_v42 = vpop.permute.xlu1 %413 }
 0xc1d   :  { %v416_v43 = vmul.f32 %v859_v41, %v414_v42 }
 0xc1f   :  { %418 = vrot.lane.b32.xlu0 %v416_v43, %s933_s21 }
 0xc91   :  { %v419_v45 = vpop.permute.xlu0 %418 }
 0xc92   :  { %v421_v47 = vadd.f32 %v419_v45, %v411_v44 }
 0xc94   :  { %860 = vtanh.f32 %v421_v47 }
 0xca1   :  { %v861_v48 = vpop.eup %860 }
 0xca2   :  { %424 = vrot.lane.b32.xlu1 %v861_v48, %s932_s20 }
 0xd14   :  { %v425_v49 = vpop.permute.xlu1 %424 }
 0xd15   :  { %v1075_v50 = vmul.f32 %v859_v41, %v425_v49 }
 0xd17   :  { %v434_v51 = vpack.c.bf16 %v1075_v50, %v1075_v50 }
 0xd19   :  { %436 = vrot.lane.b32.xlu0 %v434_v51, %s933_s21 }
 0xd8b   :  { %v437_v52 = vpop.permute.xlu0 %436 }
 0xd8c   :  { %794 = vmatmul.mubr.msk.bf16.vlgmr.msra.gmra.mxu1 %vm21_vm1, %v437_v52 }
 0xd8d   :  { %806 = vmatpush3.bf16.msra.mxu1 %v965_v0  ;;  %809 = vmatprep.mubr.msk.bf16.mxu1 %vm931_vm0, %v930_v1 }
 0xd8e   :  { %807 = vmatprep.subr.bf16.mxu1 %v930_v1 }
 0xd91   :  { %808 = vmatpush3.bf16.msra.mxu1 %v973_v2 }
 0xe4c   :  { %v475_v54 = vpop.f32.mrf.mxu1 }
 0xe4d   :  { %v481_v55 = vadd.f32 %v475_v54, %v433_v53 }
 0xe4e   :  { %v795_v56 = vpop.f32.mrf.mxu1 }
 0xe4f   :  { %862 = vtanh.f32 %v481_v55  ;;  %v720_v0 = vmul.f32 -1.442695, %v481_v55 }
 0xe50   :  { %v478_v57 = vpop.f32.mrf.mxu1 }
 0xe51   :  { %864 = vpow2.f32 %v720_v0 }
 0xe52   :  { %v796_v58 = vpop.f32.mrf.mxu1 }
 0xe5c   :  { %v863_v59 = vpop.eup %862 }
 0xe5d   :  { %491 = vrot.lane.b32.xlu1 %v863_v59, %s932_s20 }
 0xe5e   :  { %v865_v60 = vpop.eup %864 }
 0xe5f   :  { %v485_v61 = vadd.f32 1.0, %v865_v60 }
 0xe61   :  { %866 = vrcp.f32 %v485_v61 }
 0xe6e   :  { %v867_v1 = vpop.eup %866 }
 0xe6f   :  { %v489_v63 = vmul.f32 %v867_v1, %v421_v47 }
 0xecf   :  { %v492_v2 = vpop.permute.xlu1 %491 }
 0xed0   :  { %v494_v62 = vmul.f32 %v867_v1, %v492_v2 }
 0xed2   :  { %496 = vrot.lane.b32.xlu0 %v494_v62, %s933_s21 }
 0xf44   :  { %v497_v3 = vpop.permute.xlu0 %496 }
 0xf45   :  { %v499_v4 = vadd.f32 %v497_v3, %v489_v63 }
 0xf47   :  { %868 = vtanh.f32 %v499_v4 }
 0xf54   :  { %v869_v5 = vpop.eup %868 }
 0xf55   :  { %502 = vrot.lane.b32.xlu1 %v869_v5, %s932_s20 }
 0xfc7   :  { %v503_v7 = vpop.permute.xlu1 %502 }
 0xfc8   :  { %v1092_v8 = vmul.f32 %v867_v1, %v503_v7 }
 0xfca   :  { %v512_v9 = vpack.c.bf16 %v1092_v8, %v1092_v8 }
 0xfcc   :  { %514 = vrot.lane.b32.xlu0 %v512_v9, %s933_s21 }
0x103e   :  { %v515_v10 = vpop.permute.xlu0 %514 }
0x103f   :  { %802 = vmatmul.mubr.msk.bf16.vlgmr.msra.gmra.mxu0 %vm21_vm1, %v515_v10 }
0x10ff   :  { %v553_v12 = vpop.f32.mrf.mxu0 }
0x1100   :  { %v559_v13 = vadd.f32 %v553_v12, %v511_v11 }
0x1101   :  { %v803_v14 = vpop.f32.mrf.mxu0 }
0x1102   :  { %870 = vtanh.f32 %v559_v13  ;;  %v722_v18 = vmul.f32 -1.442695, %v559_v13 }
0x1103   :  { %v556_v15 = vpop.f32.mrf.mxu0 }
0x1104   :  { %872 = vpow2.f32 %v722_v18 }
0x1105   :  { %v804_v16 = vpop.f32.mrf.mxu0 }
0x110f   :  { %v871_v17 = vpop.eup %870 }
0x1110   :  { %569 = vrot.lane.b32.xlu1 %v871_v17, %s932_s20 }
0x1111   :  { %v873_v19 = vpop.eup %872 }
0x1112   :  { %v563_v20 = vadd.f32 1.0, %v873_v19 }
0x1114   :  { %874 = vrcp.f32 %v563_v20 }
0x1121   :  { %v875_v21 = vpop.eup %874 }
0x1122   :  { %v567_v24 = vmul.f32 %v875_v21, %v499_v4 }
0x1182   :  { %v570_v22 = vpop.permute.xlu1 %569 }
0x1183   :  { %v572_v23 = vmul.f32 %v875_v21, %v570_v22 }
0x1185   :  { %574 = vrot.lane.b32.xlu0 %v572_v23, %s933_s21 }
0x11f7   :  { %v575_v26 = vpop.permute.xlu0 %574 }
0x11f8   :  { %v577_v27 = vadd.f32 %v575_v26, %v567_v24 }
0x11fa   :  { %876 = vtanh.f32 %v577_v27 }
0x1207   :  { %v877_v29 = vpop.eup %876 }
0x1208   :  { %580 = vrot.lane.b32.xlu1 %v877_v29, %s932_s20 }
0x127a   :  { %v581_v30 = vpop.permute.xlu1 %580 }
0x127b   :  { %v583_v31 = vmul.f32 %v875_v21, %v581_v30 }
0x127d   :  { %v590_v32 = vpack.c.bf16 %v583_v31, %v583_v31 }
0x127f   :  { %592 = vrot.lane.b32.xlu0 %v590_v32, %s933_s21 }
0x12f1   :  { %v593_v33 = vpop.permute.xlu0 %592 }
0x12f2   :  { %810 = vmatmul.mubr.msk.bf16.vlgmr.msra.gmra.mxu1 %vm21_vm1, %v593_v33 }
0x13b2   :  { %v631_v35 = vpop.f32.mrf.mxu1 }
0x13b3   :  { %v637_v36 = vadd.f32 %v631_v35, %v589_v34 }
0x13b4   :  { %v811_v37 = vpop.f32.mrf.mxu1 }
0x13b5   :  { %878 = vtanh.f32 %v637_v36  ;;  %v724_v41 = vmul.f32 -1.442695, %v637_v36 }
0x13b6   :  { %v634_v38 = vpop.f32.mrf.mxu1 }
0x13b7   :  { %880 = vpow2.f32 %v724_v41 }
0x13b8   :  { %v812_v39 = vpop.f32.mrf.mxu1 }
0x13c2   :  { %v879_v40 = vpop.eup %878 }
0x13c3   :  { %647 = vrot.lane.b32.xlu1 %v879_v40, %s932_s20 }
0x13c4   :  { %v881_v42 = vpop.eup %880 }
0x13c5   :  { %v641_v43 = vadd.f32 1.0, %v881_v42 }
0x13c7   :  { %882 = vrcp.f32 %v641_v43 }
0x13d4   :  { %v883_v44 = vpop.eup %882 }
0x13d5   :  { %v645_v48 = vmul.f32 %v883_v44, %v577_v27 }
0x1435   :  { %v648_v45 = vpop.permute.xlu1 %647 }
0x1436   :  { %v650_v47 = vmul.f32 %v883_v44, %v648_v45 }
0x1438   :  { %652 = vrot.lane.b32.xlu0 %v650_v47, %s933_s21 }
0x143c   :  { %118 = vrot.lane.b32.xlu0 %v1004_v25, %s933_s21 }
0x1440   :  { %196 = vrot.lane.b32.xlu0 %v1022_v46, %s932_s20 }
0x1444   :  { %275 = vrot.lane.b32.xlu0 %v1040_v6, %s934_s0 }
0x14aa   :  { %v653_v49 = vpop.permute.xlu0 %652 }
0x14ab   :  { %v655_v51 = vadd.f32 %v653_v49, %v645_v48 }
0x14ad   :  { %884 = vtanh.f32 %v655_v51 }
0x14ae   :  { %v119_v52 = vpop.permute.xlu0 %118 }
0x14af   :  { %121 = vst.msk [vmem:[%s1167_s2] sm:$0xff] %vm21_vm1, %v119_v52 }
0x14b2   :  { %v197_v53 = vpop.permute.xlu0 %196 }
0x14b3   :  { %200 = vst.msk [vmem:[%s1167_s2] sm:$0xff] %vm199_vm2, %v197_v53 }
0x14b6   :  { %v276_v25 = vpop.permute.xlu0 %275 }
0x14b7   :  { %279 = vst.msk [vmem:[%s1167_s2] sm:$0xff] %vm278_vm3, %v276_v25 }
0x14b8   :  { %354 = vst.msk [vmem:[%s1167_s2] sm:$0xff] %vm353_vm4, %v1058_v28 }
0x14ba   :  { %v885_v46 = vpop.eup %884 }
0x14bb   :  { %658 = vrot.lane.b32.xlu1 %v885_v46, %s932_s20 }
0x14bf   :  { %429 = vrot.lane.b32.xlu1 %v1075_v50, %s933_s21 }
0x14c3   :  { %507 = vrot.lane.b32.xlu1 %v1092_v8, %s932_s20  ;;  %s935_s20 = smov [#allocation6]  }
0x14c4   :  { %s693_s23 = sshll.u32 %s935_s20, 4  ;;  %s694_s23 = int_to_ptr.vmem [resolvable:$true] %s693_s23 }
0x14c5   :  { %s886_s27 = scalar_lea.vmem %s694_s23, 128  ;;  %p891_p1 = scmp.lt.s32.totalorder %s694_s23, %s694_s23 }
0x14c6   :  { %p887_p0 = scmp.ne.s32.totalorder %s694_s23, %s886_s27  ;;  %p892_p2 = scmp.lt.s32.totalorder %s886_s27, %s886_s27 }
0x14c7   :  { %585 = vrot.lane.b32.xlu1 %v583_v31, %s934_s0 }
0x14c8   :  { %p893_p3 = por %p892_p2, %p891_p1 }
0x14ca   :  { %p894_p4 = pnand %p893_p3, %p887_p0 }
0x14cb   :  { %669 = vrot.lane.b32.xlu1 %v655_v51, %s934_s0 }
0x152d   :  { %v659_v6 = vpop.permute.xlu1 %658 }
0x152e   :  { %v661_v54 = vmul.f32 %v883_v44, %v659_v6 }
0x1530   :  { %664 = vrot.lane.b32.xlu0 %v661_v54, %s933_s21 }
0x1531   :  { %v430_v55 = vpop.permute.xlu1 %429 }
0x1532   :  { %432 = vst.msk [vmem:[%s1167_s2 + $0x8] sm:$0xff] %vm21_vm1, %v430_v55 }
0x1535   :  { %v508_v28 = vpop.permute.xlu1 %507 }
0x1536   :  { %510 = vst.msk [vmem:[%s1167_s2 + $0x8] sm:$0xff] %vm199_vm2, %v508_v28 }
0x1539   :  { %v586_v50 = vpop.permute.xlu1 %585 }
0x153a   :  { %588 = vst.msk [vmem:[%s1167_s2 + $0x8] sm:$0xff] %vm278_vm3, %v586_v50 }
0x153b   :  { %662 = vst.msk [vmem:[%s1167_s2 + $0x8] sm:$0xff] %vm353_vm4, %v661_v54 }
0x153d   :  { %v670_v56 = vpop.permute.xlu1 %669 }
0x153e   :  { %672 = vst.msk [vmem:[#allocation3] sm:$0xff] %vm21_vm1, %v670_v56  ;;  %674 = vst.msk [vmem:[#allocation6] sm:$0xff] %vm21_vm1, %v670_v56 }
0x153f   :  { %897 = shalt.err (!%p894_p4)
}
0x1540   :  { %696 = dma.vmem_to_hbm [thread:$0]  %s694_s23, 128, %s1169_s4, [#allocation7]  }
0x1541   :  { %s936_s30 = smov [#allocation4]  }
0x1542   :  { %s683_s5 = sshll.u32 %s936_s30, 4  ;;  %s684_s5 = int_to_ptr.vmem [resolvable:$true] %s683_s5 }
0x1543   :  { %s906_s2 = scalar_lea.vmem %s684_s5, 128  ;;  %p911_p6 = scmp.lt.s32.totalorder %s684_s5, %s684_s5 }
0x1544   :  { %p907_p5 = scmp.ne.s32.totalorder %s684_s5, %s906_s2  ;;  %p912_p7 = scmp.lt.s32.totalorder %s906_s2, %s906_s2 }
0x1546   :  { %p913_p8 = por %p912_p7, %p911_p6 }
0x1548   :  { %p914_p9 = pnand %p913_p8, %p907_p5 }
0x15a2   :  { %v665_v57 = vpop.permute.xlu0 %664 }
0x15a3   :  { %667 = vst.msk [vmem:[#allocation2] sm:$0xff] %vm21_vm1, %v665_v57  ;;  %673 = vst.msk [vmem:[#allocation4] sm:$0xff] %vm21_vm1, %v665_v57 }
0x15a4   :  { %917 = shalt.err (!%p914_p9)
}
0x15a5   :  { %686 = dma.vmem_to_hbm [thread:$0]  %s684_s5, 128, %s1168_s3, [#allocation5]  }
0x15a6   :  { %926 = dma.done.wait [#allocation5], 128  }
0x15a7   :  { %927 = vsyncadd [#allocation5], 4294967168 }
0x15a8   :  { %928 = dma.done.wait [#allocation7], 128  }
0x15a9   :  { %929 = vsyncadd [#allocation7], 4294967168 }
0x15aa   :  { %705 = vsyncpa [#allocation5], 1 }
0x15ab   :  { %706 = vsyncpa [#allocation7], 1 }

</bundles_post_ra>
